<compile_context>
chip_gen: v7x
topology: tpu7x:2x2x1
jax: 0.10.0
libtpu: 0.0.40
codegen_flags: <defaults>
</compile_context>

<pallas_src>
import functools

import numpy as np
import jax
import jax.numpy as jnp
from jax import lax
from jax.experimental import pallas as pl
from jax.experimental.pallas import tpu as pltpu


def _round_up(a, b):
    return (a + b - 1) // b * b


def _pad_points(p, target):
    """Pad the points axis up to `target` by replicating the first point."""
    b, n, d = p.shape
    if n == target:
        return p
    pad = jnp.broadcast_to(p[:, :1, :], (b, target - n, d))
    return jnp.concatenate([p, pad], axis=1)


def _chamfer_kernel(x_ref, y_ref, out_ref,
                    x2_ref, y2_ref, row_min_ref, col_min_ref,
                    acc_xy_ref, acc_yx_ref, *,
                    bidirectional, n_true, m_true, n_tile, m_tile,
                    n_padded, m_padded, n_tiles, m_tiles):
    ni = pl.program_id(1)   # N-tile index (outer)
    mi = pl.program_id(2)   # M-tile index (inner)

    xb = x_ref[0]           # (n_tile, D), native dtype (fed to MXU as-is)
    yb = y_ref[0]           # (m_tile, D)
    d = xb.shape[1]

    inv_n = jnp.float32(1.0 / n_true)
    inv_m = jnp.float32(1.0 / m_true)

    # --- per-batch accumulator reset -----------------------------------------
    @pl.when(jnp.logical_and(ni == 0, mi == 0))
    def _():
        acc_xy_ref[...] = jnp.zeros_like(acc_xy_ref)
        if bidirectional:
            acc_yx_ref[...] = jnp.zeros_like(acc_yx_ref)

    # --- hoisted squared norms (f32) -----------------------------------------
    @pl.when(mi == 0)
    def _():
        xf = xb.astype(jnp.float32)
        x2_ref[...] = jnp.sum(xf * xf, axis=1, keepdims=True)        # (n_tile, 1)

    @pl.when(ni == 0)
    def _():
        yf = yb.astype(jnp.float32)
        ones = jnp.ones((1, d), jnp.float32)
        y2_ref[mi] = lax.dot_general(                                 # (1, m_tile)
            ones, yf * yf, (((1,), (1,)), ((), ())),
            preferred_element_type=jnp.float32)

    # --- squared pairwise distances for this (N, M) tile ---------------------
    # 2x is folded into the small (n_tile, D) MXU operand; the max(.,0) clamp is
    # deferred to the reduced vectors (min/max commute), so the full tile only
    # sees the two broadcast add/sub VPU ops.
    x2 = x2_ref[...]                     # (n_tile, 1)
    y2 = y2_ref[mi]                      # (1, m_tile)
    xy2 = lax.dot_general(xb * 2, yb, (((1,), (1,)), ((), ())),
                          preferred_element_type=jnp.float32)         # (n_tile, m_tile)
    d2 = (x2 - xy2) + y2

    # Straight-line full-tile reductions (d2 is consumed only here, in-flight).
    tile_row_min = jnp.min(d2, axis=1, keepdims=True)                 # (n_tile, 1)
    row_prev = row_min_ref[...]
    row_min_ref[...] = jnp.where(mi == 0, tile_row_min,
                                 jnp.minimum(row_prev, tile_row_min))

    if bidirectional:
        tile_col_min = jnp.min(d2, axis=0, keepdims=True)             # (1, m_tile)
        col_prev = col_min_ref[mi]
        col_min_ref[mi] = jnp.where(ni == 0, tile_col_min,
                                    jnp.minimum(col_prev, tile_col_min))

        # y -> x finalize for this M tile (columns complete at last N tile).
        @pl.when(ni == n_tiles - 1)
        def _():
            cd = jnp.sqrt(jnp.maximum(col_min_ref[mi], 0.0))          # (1, m_tile)
            if m_padded != m_true:
                cols = (lax.broadcasted_iota(jnp.int32, (1, m_tile), 1)
                        + mi * m_tile)
                cd = jnp.where(cols < m_true, cd, 0.0)
            acc_yx_ref[...] = (acc_yx_ref[...]
                               + jnp.sum(cd, axis=1, keepdims=True) * inv_m)

    # --- x -> y finalize for this N tile (row mins complete at last M tile) --
    @pl.when(mi == m_tiles - 1)
    def _():
        rd = jnp.sqrt(jnp.maximum(row_min_ref[...], 0.0))             # (n_tile, 1)
        if n_padded != n_true:
            rows = (lax.broadcasted_iota(jnp.int32, (n_tile, 1), 0)
                    + ni * n_tile)
            rd = jnp.where(rows < n_true, rd, 0.0)
        acc_xy_ref[...] = (acc_xy_ref[...]
                           + jnp.sum(rd, axis=0, keepdims=True) * inv_n)

    # --- write this batch's loss into the lane-dense output block ------------
    @pl.when(jnp.logical_and(ni == n_tiles - 1, mi == m_tiles - 1))
    def _():
        loss = acc_xy_ref[...]
        if bidirectional:
            loss = loss + acc_yx_ref[...]
        out_ref[...] = jnp.broadcast_to(loss[None], out_ref.shape)


def chamfer_distance(x, y, bidirectional=True, n_tile=256, m_tile=1024):
    """Pallas TPU Chamfer distance. x: (B, N, D), y: (B, M, D) -> scalar f32."""
    B, N, D = x.shape
    B2, M, D2 = y.shape
    assert B == B2 and D == D2, "batch / feature dims must match"

    # Tile sizes: lane-dense M tile, sublane-aligned N tile.  d2 working set is
    # N_TILE * M_TILE * 4 B (256 x 1024 = 1 MiB); persistent scratch is
    # O(M_padded * 32 B) + O(N_TILE) -> comfortably inside every chip's VMEM.
    n_tile = _round_up(n_tile, 8)
    m_tile = _round_up(m_tile, 128)
    N_TILE = min(_round_up(N, 8), n_tile)
    M_TILE = min(_round_up(M, 128), m_tile)
    N_padded = _round_up(N, N_TILE)
    M_padded = _round_up(M, M_TILE)
    n_tiles = N_padded // N_TILE
    m_tiles = M_padded // M_TILE

    # Pad with replicated first points: duplicates never change a min, so no
    # per-tile masking is needed; padded rows/cols are excluded from the means.
    xp = _pad_points(x, N_padded)
    yp = _pad_points(y, M_padded)

    kernel = functools.partial(
        _chamfer_kernel, bidirectional=bidirectional,
        n_true=N, m_true=M, n_tile=N_TILE, m_tile=M_TILE,
        n_padded=N_padded, m_padded=M_padded,
        n_tiles=n_tiles, m_tiles=m_tiles)

    out = pl.pallas_call(
        kernel,
        out_shape=jax.ShapeDtypeStruct((B, 1, 128), jnp.float32),
        grid=(B, n_tiles, m_tiles),
        in_specs=[
            pl.BlockSpec((1, N_TILE, D), lambda b, ni, mi: (b, ni, 0)),
            pl.BlockSpec((1, M_TILE, D), lambda b, ni, mi: (b, mi, 0)),
        ],
        out_specs=pl.BlockSpec((1, 1, 128), lambda b, ni, mi: (b, 0, 0)),
        scratch_shapes=[
            pltpu.VMEM((N_TILE, 1), jnp.float32),            # hoisted ||x||^2 (per N tile)
            pltpu.VMEM((m_tiles, 1, M_TILE), jnp.float32),   # hoisted ||y||^2 (lane-dense)
            pltpu.VMEM((N_TILE, 1), jnp.float32),            # x->y running row min (d^2)
            pltpu.VMEM((m_tiles, 1, M_TILE), jnp.float32),   # y->x running col min (d^2)
            pltpu.VMEM((1, 1), jnp.float32),                 # x->y per-batch sum
            pltpu.VMEM((1, 1), jnp.float32),                 # y->x per-batch sum
        ],
        compiler_params=pltpu.CompilerParams(
            dimension_semantics=("parallel", "arbitrary", "arbitrary")),
    )(xp, yp)

    # Per-batch losses live in lane 0 of each batch's output block.
    return out[:, 0, 0].mean()


def chamfer_reference(x, y, bidirectional=True):
    """Pure-JAX reference mirroring the PyTorch module exactly."""
    diff = x[:, :, None, :] - y[:, None, :, :]          # (B, N, M, D)
    dist = jnp.sqrt(jnp.sum(diff * diff, axis=-1))      # (B, N, M)
    loss = jnp.min(dist, axis=2).mean(axis=1)           # (B,)
    if bidirectional:
        loss = loss + jnp.min(dist, axis=1).mean(axis=1)
    return loss.mean()


if __name__ == "__main__":
    key = jax.random.PRNGKey(0)
    kx1, ky1, kx2, ky2 = jax.random.split(key, 4)

    # Case 1: small clouds, single tile per batch (M padded to one 128-lane tile).
    B, N, M, D = 2, 64, 48, 8
    x = jax.random.normal(kx1, (B, N, D), dtype=jnp.float32)
    y = jax.random.normal(ky1, (B, M, D), dtype=jnp.float32)

    out_bi = jax.block_until_ready(chamfer_distance(x, y, bidirectional=True))
    ref_bi = jax.block_until_ready(chamfer_reference(x, y, bidirectional=True))
    np.testing.assert_allclose(np.asarray(out_bi), np.asarray(ref_bi),
                               rtol=1e-4, atol=2e-4)

    out_uni = jax.block_until_ready(chamfer_distance(x, y, bidirectional=False))
    ref_uni = jax.block_until_ready(chamfer_reference(x, y, bidirectional=False))
    np.testing.assert_allclose(np.asarray(out_uni), np.asarray(ref_uni),
                               rtol=1e-4, atol=2e-4)

    # Case 2: exercises the multi-tile running-min path (3 N tiles x 2 M tiles).
    B2_, N2_, M2_, D2_ = 2, 300, 200, 3
    x2 = jax.random.normal(kx2, (B2_, N2_, D2_), dtype=jnp.float32)
    y2 = jax.random.normal(ky2, (B2_, M2_, D2_), dtype=jnp.float32)
    out2 = jax.block_until_ready(
        chamfer_distance(x2, y2, bidirectional=True, n_tile=128, m_tile=128))
    ref2 = jax.block_until_ready(chamfer_reference(x2, y2, bidirectional=True))
    np.testing.assert_allclose(np.asarray(out2), np.asarray(ref2),
                               rtol=2e-4, atol=2e-4)

    print("KERNEL_OK")
</pallas_src>

<mosaic_0001>
module attributes {stable_mosaic.version = 11 : i64} {
  func.func @_chamfer_kernel(%arg0: i32, %arg1: i32, %arg2: i32, %arg3: memref<1x64x8xf32, #tpu.memory_space<vmem>>, %arg4: memref<1x128x8xf32, #tpu.memory_space<vmem>>, %arg5: memref<1x1x128xf32, #tpu.memory_space<vmem>>, %arg6: memref<64x1xf32, #tpu.memory_space<vmem>>, %arg7: memref<1x1x128xf32, #tpu.memory_space<vmem>>, %arg8: memref<64x1xf32, #tpu.memory_space<vmem>>, %arg9: memref<1x1x128xf32, #tpu.memory_space<vmem>>, %arg10: memref<1x1xf32, #tpu.memory_space<vmem>>, %arg11: memref<1x1xf32, #tpu.memory_space<vmem>>) attributes {dimension_semantics = [#tpu.dimension_semantics<parallel>, #tpu.dimension_semantics<arbitrary>, #tpu.dimension_semantics<arbitrary>], iteration_bounds = array<i64: 2, 1, 1>, scalar_prefetch = 0 : i64, scratch_operands = 6 : i64, tpu.core_type = #tpu.core_type<tc>, window_params = [{transform_indices = @transform_0, window_bounds = array<i64: 1, 64, 8>}, {transform_indices = @transform_1, window_bounds = array<i64: 1, 128, 8>}, {transform_indices = @transform_2, window_bounds = array<i64: 1, 1, 128>}]} {
    %c0 = arith.constant 0 : index
    %c0_0 = arith.constant 0 : index
    %c0_1 = arith.constant 0 : index
    %0 = vector.load %arg3[%c0, %c0_0, %c0_1] : memref<1x64x8xf32, #tpu.memory_space<vmem>>, vector<1x64x8xf32>
    %1 = vector.shape_cast %0 : vector<1x64x8xf32> to vector<64x8xf32>
    %c0_2 = arith.constant 0 : index
    %c0_3 = arith.constant 0 : index
    %c0_4 = arith.constant 0 : index
    %2 = vector.load %arg4[%c0_2, %c0_3, %c0_4] : memref<1x128x8xf32, #tpu.memory_space<vmem>>, vector<1x128x8xf32>
    %3 = vector.shape_cast %2 : vector<1x128x8xf32> to vector<128x8xf32>
    %c0_i32 = arith.constant 0 : i32
    %4 = arith.cmpi eq, %arg1, %c0_i32 : i32
    %c0_i32_5 = arith.constant 0 : i32
    %5 = arith.cmpi eq, %arg2, %c0_i32_5 : i32
    %6 = arith.andi %4, %5 : i1
    %7 = arith.extui %6 : i1 to i32
    %c0_i32_6 = arith.constant 0 : i32
    %8 = arith.cmpi ne, %7, %c0_i32_6 : i32
    scf.if %8 {
      %cst_37 = arith.constant 0.000000e+00 : f32
      %56 = vector.broadcast %cst_37 : f32 to vector<1x1xf32>
      %c0_38 = arith.constant 0 : index
      %c0_39 = arith.constant 0 : index
      %57 = vector.load %arg10[%c0_38, %c0_39] : memref<1x1xf32, #tpu.memory_space<vmem>>, vector<1x1xf32>
      tpu.vector_store %arg10[%c0_38, %c0_39], %56 {strides = array<i32>} : memref<1x1xf32, #tpu.memory_space<vmem>>, vector<1x1xf32>,
      %cst_40 = arith.constant 0.000000e+00 : f32
      %58 = vector.broadcast %cst_40 : f32 to vector<1x1xf32>
      %c0_41 = arith.constant 0 : index
      %c0_42 = arith.constant 0 : index
      %59 = vector.load %arg11[%c0_41, %c0_42] : memref<1x1xf32, #tpu.memory_space<vmem>>, vector<1x1xf32>
      tpu.vector_store %arg11[%c0_41, %c0_42], %58 {strides = array<i32>} : memref<1x1xf32, #tpu.memory_space<vmem>>, vector<1x1xf32>,
    } else {
    }
    %c0_i32_7 = arith.constant 0 : i32
    %9 = arith.cmpi eq, %arg2, %c0_i32_7 : i32
    %10 = arith.extui %9 : i1 to i32
    %c0_i32_8 = arith.constant 0 : i32
    %11 = arith.cmpi ne, %10, %c0_i32_8 : i32
    scf.if %11 {
      %56 = arith.mulf %1, %1 : vector<64x8xf32>
      %cst_37 = arith.constant dense<0.000000e+00> : vector<64xf32>
      %57 = vector.multi_reduction <add>, %56, %cst_37 [1] : vector<64x8xf32> to vector<64xf32>
      %58 = vector.shape_cast %57 : vector<64xf32> to vector<64x1xf32>
      %c0_38 = arith.constant 0 : index
      %c0_39 = arith.constant 0 : index
      %59 = vector.load %arg6[%c0_38, %c0_39] : memref<64x1xf32, #tpu.memory_space<vmem>>, vector<64x1xf32>
      tpu.vector_store %arg6[%c0_38, %c0_39], %58 {strides = array<i32>} : memref<64x1xf32, #tpu.memory_space<vmem>>, vector<64x1xf32>,
    } else {
    }
    %c0_i32_9 = arith.constant 0 : i32
    %12 = arith.cmpi eq, %arg1, %c0_i32_9 : i32
    %13 = arith.extui %12 : i1 to i32
    %c0_i32_10 = arith.constant 0 : i32
    %14 = arith.cmpi ne, %13, %c0_i32_10 : i32
    scf.if %14 {
      %cst_37 = arith.constant 1.000000e+00 : f32
      %56 = vector.broadcast %cst_37 : f32 to vector<1x8xf32>
      %57 = arith.mulf %3, %3 : vector<128x8xf32>
      %cst_38 = arith.constant dense<0.000000e+00> : vector<1x128xf32>
      %58 = tpu.matmul %56, %57, %cst_38 {dimension_numbers = #tpu.dot_dimension_numbers<[1], [1], [0], [0], [0, 0, 1, 0], [], []>} : vector<1x8xf32>, vector<128x8xf32>, vector<1x128xf32> -> vector<1x128xf32>
      %59 = arith.index_cast %arg2 : i32 to index
      %c0_39 = arith.constant 0 : index
      %c0_40 = arith.constant 0 : index
      %60 = vector.load %arg7[%59, %c0_39, %c0_40] : memref<1x1x128xf32, #tpu.memory_space<vmem>>, vector<1x1x128xf32>
      %61 = vector.shape_cast %60 : vector<1x1x128xf32> to vector<1x128xf32>
      %62 = vector.shape_cast %58 : vector<1x128xf32> to vector<1x1x128xf32>
      tpu.vector_store %arg7[%59, %c0_39, %c0_40], %62 {strides = array<i32>} : memref<1x1x128xf32, #tpu.memory_space<vmem>>, vector<1x1x128xf32>,
    } else {
    }
    %c0_11 = arith.constant 0 : index
    %c0_12 = arith.constant 0 : index
    %15 = vector.load %arg6[%c0_11, %c0_12] : memref<64x1xf32, #tpu.memory_space<vmem>>, vector<64x1xf32>
    %16 = arith.index_cast %arg2 : i32 to index
    %c0_13 = arith.constant 0 : index
    %c0_14 = arith.constant 0 : index
    %17 = vector.load %arg7[%16, %c0_13, %c0_14] : memref<1x1x128xf32, #tpu.memory_space<vmem>>, vector<1x1x128xf32>
    %18 = vector.shape_cast %17 : vector<1x1x128xf32> to vector<1x128xf32>
    %cst = arith.constant 2.000000e+00 : f32
    %19 = vector.broadcast %cst : f32 to vector<64x8xf32>
    %20 = arith.mulf %1, %19 : vector<64x8xf32>
    %cst_15 = arith.constant dense<0.000000e+00> : vector<64x128xf32>
    %21 = tpu.matmul %20, %3, %cst_15 {dimension_numbers = #tpu.dot_dimension_numbers<[1], [1], [0], [0], [0, 0, 1, 0], [], []>} : vector<64x8xf32>, vector<128x8xf32>, vector<64x128xf32> -> vector<64x128xf32>
    %22 = vector.broadcast %15 : vector<64x1xf32> to vector<64x128xf32>
    %23 = arith.subf %22, %21 : vector<64x128xf32>
    %24 = vector.broadcast %18 : vector<1x128xf32> to vector<64x128xf32>
    %25 = arith.addf %23, %24 : vector<64x128xf32>
    %cst_16 = arith.constant dense<0x7F800000> : vector<64xf32>
    %26 = vector.multi_reduction <minimumf>, %25, %cst_16 [1] : vector<64x128xf32> to vector<64xf32>
    %27 = vector.shape_cast %26 : vector<64xf32> to vector<64x1xf32>
    %c0_17 = arith.constant 0 : index
    %c0_18 = arith.constant 0 : index
    %28 = vector.load %arg8[%c0_17, %c0_18] : memref<64x1xf32, #tpu.memory_space<vmem>>, vector<64x1xf32>
    %c0_i32_19 = arith.constant 0 : i32
    %29 = arith.cmpi eq, %arg2, %c0_i32_19 : i32
    %30 = arith.minimumf %28, %27 : vector<64x1xf32>
    %31 = arith.select %29, %27, %30 : vector<64x1xf32>
    %c0_20 = arith.constant 0 : index
    %c0_21 = arith.constant 0 : index
    %32 = vector.load %arg8[%c0_20, %c0_21] : memref<64x1xf32, #tpu.memory_space<vmem>>, vector<64x1xf32>
    tpu.vector_store %arg8[%c0_20, %c0_21], %31 {strides = array<i32>} : memref<64x1xf32, #tpu.memory_space<vmem>>, vector<64x1xf32>,
    %cst_22 = arith.constant dense<0x7F800000> : vector<128xf32>
    %33 = vector.multi_reduction <minimumf>, %25, %cst_22 [0] : vector<64x128xf32> to vector<128xf32>
    %34 = vector.shape_cast %33 : vector<128xf32> to vector<1x128xf32>
    %35 = arith.index_cast %arg2 : i32 to index
    %c0_23 = arith.constant 0 : index
    %c0_24 = arith.constant 0 : index
    %36 = vector.load %arg9[%35, %c0_23, %c0_24] : memref<1x1x128xf32, #tpu.memory_space<vmem>>, vector<1x1x128xf32>
    %37 = vector.shape_cast %36 : vector<1x1x128xf32> to vector<1x128xf32>
    %c0_i32_25 = arith.constant 0 : i32
    %38 = arith.cmpi eq, %arg1, %c0_i32_25 : i32
    %39 = arith.minimumf %37, %34 : vector<1x128xf32>
    %40 = arith.select %38, %34, %39 : vector<1x128xf32>
    %41 = arith.index_cast %arg2 : i32 to index
    %c0_26 = arith.constant 0 : index
    %c0_27 = arith.constant 0 : index
    %42 = vector.load %arg9[%41, %c0_26, %c0_27] : memref<1x1x128xf32, #tpu.memory_space<vmem>>, vector<1x1x128xf32>
    %43 = vector.shape_cast %42 : vector<1x1x128xf32> to vector<1x128xf32>
    %44 = vector.shape_cast %40 : vector<1x128xf32> to vector<1x1x128xf32>
    tpu.vector_store %arg9[%41, %c0_26, %c0_27], %44 {strides = array<i32>} : memref<1x1x128xf32, #tpu.memory_space<vmem>>, vector<1x1x128xf32>,
    %c0_i32_28 = arith.constant 0 : i32
    %45 = arith.cmpi eq, %arg1, %c0_i32_28 : i32
    %46 = arith.extui %45 : i1 to i32
    %cst_29 = arith.constant 0.020833334 : f32
    %c0_i32_30 = arith.constant 0 : i32
    %47 = arith.cmpi ne, %46, %c0_i32_30 : i32
    scf.if %47 {
      %56 = arith.index_cast %arg2 : i32 to index
      %c0_37 = arith.constant 0 : index
      %c0_38 = arith.constant 0 : index
      %57 = vector.load %arg9[%56, %c0_37, %c0_38] : memref<1x1x128xf32, #tpu.memory_space<vmem>>, vector<1x1x128xf32>
      %58 = vector.shape_cast %57 : vector<1x1x128xf32> to vector<1x128xf32>
      %cst_39 = arith.constant 0.000000e+00 : f32
      %59 = vector.broadcast %cst_39 : f32 to vector<1x128xf32>
      %60 = arith.maximumf %58, %59 : vector<1x128xf32>
      %61 = math.sqrt %60 : vector<1x128xf32>
      %62 = tpu.iota {dimensions = array<i32: 1>} : vector<1x128xi32>
      %c128_i32 = arith.constant 128 : i32
      %63 = arith.muli %arg2, %c128_i32 : i32
      %64 = vector.broadcast %63 : i32 to vector<1x128xi32>
      %65 = arith.addi %62, %64 : vector<1x128xi32>
      %c48_i32 = arith.constant 48 : i32
      %66 = vector.broadcast %c48_i32 : i32 to vector<1x128xi32>
      %67 = arith.cmpi slt, %65, %66 : vector<1x128xi32>
      %cst_40 = arith.constant 0.000000e+00 : f32
      %68 = vector.broadcast %cst_40 : f32 to vector<1x128xf32>
      %69 = arith.select %67, %61, %68 : vector<1x128xi1>, vector<1x128xf32>
      %c0_41 = arith.constant 0 : index
      %c0_42 = arith.constant 0 : index
      %70 = vector.load %arg11[%c0_41, %c0_42] : memref<1x1xf32, #tpu.memory_space<vmem>>, vector<1x1xf32>
      %cst_43 = arith.constant dense<0.000000e+00> : vector<1xf32>
      %71 = vector.multi_reduction <add>, %69, %cst_43 [1] : vector<1x128xf32> to vector<1xf32>
      %72 = vector.shape_cast %71 : vector<1xf32> to vector<1x1xf32>
      %73 = vector.broadcast %cst_29 : f32 to vector<1x1xf32>
      %74 = arith.mulf %72, %73 : vector<1x1xf32>
      %75 = arith.addf %70, %74 : vector<1x1xf32>
      %c0_44 = arith.constant 0 : index
      %c0_45 = arith.constant 0 : index
      %76 = vector.load %arg11[%c0_44, %c0_45] : memref<1x1xf32, #tpu.memory_space<vmem>>, vector<1x1xf32>
      tpu.vector_store %arg11[%c0_44, %c0_45], %75 {strides = array<i32>} : memref<1x1xf32, #tpu.memory_space<vmem>>, vector<1x1xf32>,
    } else {
    }
    %c0_i32_31 = arith.constant 0 : i32
    %48 = arith.cmpi eq, %arg2, %c0_i32_31 : i32
    %49 = arith.extui %48 : i1 to i32
    %cst_32 = arith.constant 1.562500e-02 : f32
    %c0_i32_33 = arith.constant 0 : i32
    %50 = arith.cmpi ne, %49, %c0_i32_33 : i32
    scf.if %50 {
      %c0_37 = arith.constant 0 : index
      %c0_38 = arith.constant 0 : index
      %56 = vector.load %arg8[%c0_37, %c0_38] : memref<64x1xf32, #tpu.memory_space<vmem>>, vector<64x1xf32>
      %cst_39 = arith.constant 0.000000e+00 : f32
      %57 = vector.broadcast %cst_39 : f32 to vector<64x1xf32>
      %58 = arith.maximumf %56, %57 : vector<64x1xf32>
      %59 = math.sqrt %58 : vector<64x1xf32>
      %c0_40 = arith.constant 0 : index
      %c0_41 = arith.constant 0 : index
      %60 = vector.load %arg10[%c0_40, %c0_41] : memref<1x1xf32, #tpu.memory_space<vmem>>, vector<1x1xf32>
      %cst_42 = arith.constant dense<0.000000e+00> : vector<1xf32>
      %61 = vector.multi_reduction <add>, %59, %cst_42 [0] : vector<64x1xf32> to vector<1xf32>
      %62 = vector.shape_cast %61 : vector<1xf32> to vector<1x1xf32>
      %63 = vector.broadcast %cst_32 : f32 to vector<1x1xf32>
      %64 = arith.mulf %62, %63 : vector<1x1xf32>
      %65 = arith.addf %60, %64 : vector<1x1xf32>
      %c0_43 = arith.constant 0 : index
      %c0_44 = arith.constant 0 : index
      %66 = vector.load %arg10[%c0_43, %c0_44] : memref<1x1xf32, #tpu.memory_space<vmem>>, vector<1x1xf32>
      tpu.vector_store %arg10[%c0_43, %c0_44], %65 {strides = array<i32>} : memref<1x1xf32, #tpu.memory_space<vmem>>, vector<1x1xf32>,
    } else {
    }
    %c0_i32_34 = arith.constant 0 : i32
    %51 = arith.cmpi eq, %arg1, %c0_i32_34 : i32
    %c0_i32_35 = arith.constant 0 : i32
    %52 = arith.cmpi eq, %arg2, %c0_i32_35 : i32
    %53 = arith.andi %51, %52 : i1
    %54 = arith.extui %53 : i1 to i32
    %c0_i32_36 = arith.constant 0 : i32
    %55 = arith.cmpi ne, %54, %c0_i32_36 : i32
    scf.if %55 {
      %c0_37 = arith.constant 0 : index
      %c0_38 = arith.constant 0 : index
      %56 = vector.load %arg10[%c0_37, %c0_38] : memref<1x1xf32, #tpu.memory_space<vmem>>, vector<1x1xf32>
      %c0_39 = arith.constant 0 : index
      %c0_40 = arith.constant 0 : index
      %57 = vector.load %arg11[%c0_39, %c0_40] : memref<1x1xf32, #tpu.memory_space<vmem>>, vector<1x1xf32>
      %58 = arith.addf %56, %57 : vector<1x1xf32>
      %59 = vector.shape_cast %58 : vector<1x1xf32> to vector<1x1x1xf32>
      %60 = vector.shape_cast %59 : vector<1x1x1xf32> to vector<1x1x1xf32>
      %61 = vector.broadcast %60 : vector<1x1x1xf32> to vector<1x1x128xf32>
      %c0_41 = arith.constant 0 : index
      %c0_42 = arith.constant 0 : index
      %c0_43 = arith.constant 0 : index
      %62 = vector.load %arg5[%c0_41, %c0_42, %c0_43] : memref<1x1x128xf32, #tpu.memory_space<vmem>>, vector<1x1x128xf32>
      tpu.vector_store %arg5[%c0_41, %c0_42, %c0_43], %61 {strides = array<i32>} : memref<1x1x128xf32, #tpu.memory_space<vmem>>, vector<1x1x128xf32>,
    } else {
    }
    return
  }
  func.func @transform_0(%arg0: i32, %arg1: i32, %arg2: i32) -> (i32, i32, i32) {
    %c0_i32 = arith.constant 0 : i32
    %c0_i32_0 = arith.constant 0 : i32
    return %arg0, %arg1, %c0_i32 : i32, i32, i32
  }
  func.func @transform_1(%arg0: i32, %arg1: i32, %arg2: i32) -> (i32, i32, i32) {
    %c0_i32 = arith.constant 0 : i32
    %c0_i32_0 = arith.constant 0 : i32
    return %arg0, %arg2, %c0_i32 : i32, i32, i32
  }
  func.func @transform_2(%arg0: i32, %arg1: i32, %arg2: i32) -> (i32, i32, i32) {
    %c0_i32 = arith.constant 0 : i32
    %c0_i32_0 = arith.constant 0 : i32
    %c0_i32_1 = arith.constant 0 : i32
    return %arg0, %c0_i32, %c0_i32_0 : i32, i32, i32
  }
}

</mosaic_0001>

<bundles_post_ra>
// kernel: tpu_custom_call.1
= control target key start
LH: loop header
LB: loop body
LE: loop exit
PB: predicated region body
PF: predicated region fallthrough
CT: control target
= control target key end

     0   :  { %7 = vsyncpa [#allocation9], 0  ;;  %s1738_s0 = inlined_call_operand.vmem [shape: f32[2,64,8], index: 0, kind: input, shape index: {}]   ;;  %s1739_s1 = inlined_call_operand.vmem [shape: f32[2,128,8], index: 1, kind: input, shape index: {}]   ;;  %s1740_s2 = inlined_call_operand.hbm [shape: f32[2,1,128], index: 2, kind: output, shape index: {}]  }
   0x1   :  { %9 = vsyncpa [#allocation9 + $0x1], 0  ;;  %s1451_s9 = smov 0   ;;  %s1453_s10 = smov 0  }
   0x2   :  { %s1455_s11 = smov 0   ;;  %s1457_s12 = smov 0  }
   0x3   :  { %s1459_s13 = smov 0   ;;  %s1461_s14 = smov 0  }
   0x4 LB: > { %s1014_s15 = sadd.s32 4294967295, %s1428_s14   ;;  %s1015_s16 = sadd.s32 4294967294, %s1428_s14   ;;  %s1428_s14 = sphi %s1461_s14, %s15_s14   ;;  %s1424_s13 = sphi %s1459_s13, %s1749_s13   ;;  %s1420_s12 = sphi %s1457_s12, %s1748_s12   ;;  %s1416_s11 = sphi %s1455_s11, %s1747_s11   ;;  %s1412_s10 = sphi %s1453_s10, %s1746_s10   ;;  %s1408_s9 = sphi %s1451_s9, %s1745_s9  }
   0x5   : > { %s34_s17 = sadd.s32 1, %s1424_s13  ;;  %s97_s18 = sadd.s32 1, %s1416_s11 }
   0x6   : > { %p36_p0 = scmp.ge.s32.totalorder %s34_s17, 2  ;;  %p107_p1 = scmp.ne.s32.totalorder %s1416_s11, %s1412_s10 }
   0x7   : > { %p108_p2 = scmp.eq.s32.totalorder %s1014_s15, 1  ;;  %p113_p3 = scmp.ne.s32.totalorder %s1412_s10, %s1408_s9 }
   0x8   : > { %s1751_s17 = smov (%p36_p0, %s34_s17), 0  ;;  %p114_p5 = scmp.eq.s32.totalorder %s1015_s16, 1 }
   0x9   : > { %p1491_p4 = por %p108_p2, %p107_p1  ;;  %s94_s20 = ssub.s32 %s1424_s13, %s1751_s17 }
   0xa   : > { %p1018_p6 = scmp.ge.s32.totalorder %s1428_s14, 1  ;;  %p95_p7 = scmp.eq.s32.totalorder %s94_s20, 0 }
   0xb   : > { %p1498_p8 = por %p114_p5, %p113_p3  ;;  %p158_p9 = scmp.lt.s32.totalorder %s1428_s14, 3 }
   0xc   : > { %s1504_s22 = scalar_select %p95_p7, %s1416_s11, %s97_s18  }
   0xd   : > { %p159_p10 = pnand %p1018_p6, %p158_p9 }
   0xe   : > { %p193_p11 = scmp.lt.s32.totalorder (!%p159_p10), %s1420_s12, 1  ;;  %vm242_vm0 = vcmask (!%p159_p10), 0   ;;  %v1430_v0 = vmov (!%p159_p10), 0.0|0.0   ;;  %v1431_v1 = vmov (!%p159_p10), 0.0   ;;  %vm256_vm1 = vcmask (!%p159_p10), 64512   ;;  %s190_s4 = sand.u32 (!%p159_p10), 1, %s1412_s10  }
   0xf   : > { %162 = sbr.rel (%p159_p10) target bundleno = 685 (0x2ad), region = 28  ;;  %1190 = vmatprep.subr.bf16.mxu0 (!%p159_p10), %v1430_v0  ;;  %243 = vst.msk [vmem:[#allocation6] sm:$0x1] (!%p159_p10), %vm242_vm0, %v1431_v1  ;;  %244 = vst.msk [vmem:[#allocation7] sm:$0x1] (!%p159_p10), %vm242_vm0, %v1431_v1  ;;  %vm1432_vm2 = vmmov (!%p159_p10), 0  }
  0x10   : > { %1143 = vmatprep.mubr.msk.f32.mxu0 (!%p159_p10), %vm1432_vm2, %v1431_v1  ;;  %vm1523_vm3 = vmpackc.low (!%p159_p10), %vm256_vm1, %vm256_vm1  ;;  %v1433_v51 = vmov (!%p159_p10), 0   ;;  %vm281_vm4 = vcmask (!%p159_p10), 7168   ;;  %vm784_vm8 = vcmask (!%p159_p10), 1040384   ;;  %s1065_s5 = sshll.u32 (!%p159_p10), %s1420_s12, 4  ;;  %s191_s6 = scalar_lea.vmem (!%p159_p10), [#allocation8], %s190_s4 }
  0x11   : > { %1330 = vset.pattern.permute.xlu0 (!%p159_p10), %v1433_v51  ;;  %1331 = vset.pattern.permute.xlu1 (!%p159_p10), %v1433_v51  ;;  %s921_s7 = sshll.u32 (!%p159_p10), %s191_s6, 4  ;;  %s1691_s16 = scalar_lea.hbm (!%p159_p10), %s1740_s2, %s1065_s5  ;;  %s1693_s7 = int_to_ptr.vmem [resolvable:$true] %s921_s7 }
  0x12   : > { %s909_s18 = scalar_lea.sflag (!%p159_p10), [#allocation9], %s190_s4  ;;  %s1350_s20 = scalar_lea.vmem (!%p159_p10), %s1693_s7, 16 }
  0x13   : > { %p1351_p12 = scmp.ne.s32.totalorder (!%p159_p10), %s1693_s7, %s1350_s20 }
  0x15   : > { %p1352_p13 = pnand (!%p159_p10), %p1351_p12, %p1491_p4 }
  0x16   : > { %s194_s23 = scalar_select %p193_p11, %s1420_s12, 1 }
  0x17   : > { %p1353_p0 = pneg %p1352_p13  ;;  %s1435_s12 = smov [#allocation8]  }
  0x18   : > { %s1068_s24 = sshll.u32 %s194_s23, 6  ;;  %s1069_s25 = sshll.u32 %s194_s23, 7 }
  0x19   : > { %s1514_s28 = scalar_lea.vmem %s1738_s0, %s1068_s24  ;;  %s1519_s3 = scalar_lea.vmem %s1739_s1, %s1069_s25 }
  0x1a   : > { %v212_v3 = vld [vmem:[%s1514_s28] sm:$0xff]  ;;  %v221_v5 = vld [vmem:[%s1519_s3 + $0x8] sm:$0xff]  ;;  %v1534_v11 = vld [vmem:[%s1514_s28 + $0x10] sm:$0xff]  ;;  %s1354_s23 = sshll.u32 %s1435_s12, 4  ;;  %s1355_s23 = int_to_ptr.vmem [resolvable:$false] %s1354_s23 }
  0x1b   : > { %v220_v4 = vld [vmem:[%s1519_s3] sm:$0xff]  ;;  %v248_v6 = vmul.f32 %v212_v3, %v212_v3  ;;  %v294_v8 = vmul.f32 %v221_v5, %v221_v5  ;;  %v1531_v10 = vld [vmem:[%s1514_s28 + $0x8] sm:$0xff]  ;;  %v222_v12 = vld [vmem:[%s1519_s3 + $0x10] sm:$0xff]  ;;  %v250_v14 = vmul.f32 %v1534_v11, %v1534_v11  ;;  %v443_v40 = vmul.f32 2.0, %v212_v3  ;;  %s1356_s24 = scalar_lea.vmem %s1355_s23, 32  ;;  %p1357_p1 = scmp.lt.s32.totalorder %s1693_s7, %s1355_s23 }
  0x1c   : > { %v293_v7 = vmul.f32 %v220_v4, %v220_v4  ;;  %v1222_v9 = vpack.c.bf16 %v221_v5, %v220_v4  ;;  %v249_v13 = vmul.f32 %v1531_v10, %v1531_v10  ;;  %v223_v15 = vld [vmem:[%s1519_s3 + $0x18] sm:$0xff]  ;;  %v1546_v17 = vld [vmem:[%s1514_s28 + $0x20] sm:$0xff]  ;;  %v1557_v23 = vld [vmem:[%s1514_s28 + $0x28] sm:$0xff]  ;;  %v295_v25 = vmul.f32 %v222_v12, %v222_v12  ;;  %p1358_p2 = scmp.lt.s32.totalorder %s1356_s24, %s1350_s20 }
  0x1d   : > { %v1543_v16 = vld [vmem:[%s1514_s28 + $0x18] sm:$0xff]  ;;  %v257_v18 = vsel %vm256_vm1, %v248_v6, 0.0  ;;  %v263_v20 = vsel %vm256_vm1, %v250_v14, 0.0  ;;  %v1228_v21 = vpack.c.bf16 %v223_v15, %v222_v12  ;;  %v296_v26 = vmul.f32 %v223_v15, %v223_v15  ;;  %v1569_v29 = vld [vmem:[%s1514_s28 + $0x30] sm:$0xff]  ;;  %v224_v31 = vld [vmem:[%s1519_s3 + $0x20] sm:$0xff]  ;;  %1178 = vmatprep.mubr.msk.f32.mxu1 %vm256_vm1, %v443_v40 }
  0x1e   : > { %v1191_v19 = vpack.c.bf16 %v294_v8, %v293_v7  ;;  %1224 = vmatprep.subr.msk.bf16.mxu1 %vm1523_vm3, %v1222_v9  ;;  %258 = vadd.xlane.f32.xlu0 %v257_v18  ;;  %v251_v22 = vmul.f32 %v1543_v16, %v1543_v16  ;;  %v260_v24 = vsel %vm256_vm1, %v249_v13, 0.0  ;;  %v252_v27 = vmul.f32 %v1546_v17, %v1546_v17  ;;  %v225_v32 = vld [vmem:[%s1519_s3 + $0x28] sm:$0xff]  ;;  %v1576_v33 = vld [vmem:[%s1514_s28 + $0x38] sm:$0xff]  ;;  %v226_v45 = vld [vmem:[%s1519_s3 + $0x30] sm:$0xff]  ;;  %p1359_p3 = por %p1358_p2, %p1357_p1 }
  0x1f   : > { %1227 = vmatpush3.bf16.xpose.msk.msra.mxu1 %vm1523_vm3, %v1222_v9  ;;  %264 = vadd.xlane.f32.xlu1 %v263_v20  ;;  %v253_v30 = vmul.f32 %v1557_v23, %v1557_v23  ;;  %v1195_v34 = vpack.c.bf16 %v296_v26, %v295_v25  ;;  %v1234_v36 = vpack.c.bf16 %v225_v32, %v224_v31  ;;  %v227_v46 = vld [vmem:[%s1519_s3 + $0x38] sm:$0xff]  ;;  %v228_v52 = vld [vmem:[%s1519_s3 + $0x40] sm:$0xff]  ;;  %v229_v53 = vld [vmem:[%s1519_s3 + $0x48] sm:$0xff]  ;;  %v445_v20 = vmul.f32 2.0, %v1534_v11 }
  0x20   : > { %1193 = vmatpush3.bf16.xpose.msk.msra.mxu0 %vm1523_vm3, %v1191_v19  ;;  %1230 = vmatprep.subr.msk.bf16.mxu1 %vm1523_vm3, %v1228_v21  ;;  %v266_v28 = vsel %vm256_vm1, %v251_v22, 0.0  ;;  %v269_v35 = vsel %vm256_vm1, %v252_v27, 0.0  ;;  %v254_v37 = vmul.f32 %v1569_v29, %v1569_v29  ;;  %v255_v39 = vmul.f32 %v1576_v33, %v1576_v33  ;;  %v230_v58 = vld [vmem:[%s1519_s3 + $0x50] sm:$0xff]  ;;  %v231_v59 = vld [vmem:[%s1519_s3 + $0x58] sm:$0xff]  ;;  %v232_v1 = vld [vmem:[%s1519_s3 + $0x60] sm:$0xff]  ;;  %p1360_p5 = pnand %p1359_p3, %p1353_p0 }
  0x21   : > { %1194 = vmatprep.subr.bf16.mxu0 %v1430_v0  ;;  %v272_v38 = vsel %vm256_vm1, %v253_v30, 0.0  ;;  %v297_v41 = vmul.f32 %v224_v31, %v224_v31  ;;  %v298_v42 = vmul.f32 %v225_v32, %v225_v32  ;;  %v1240_v48 = vpack.c.bf16 %v227_v46, %v226_v45  ;;  %v233_v3 = vld [vmem:[%s1519_s3 + $0x68] sm:$0xff]  ;;  %v234_v8 = vld [vmem:[%s1519_s3 + $0x70] sm:$0xff]  ;;  %v235_v9 = vld [vmem:[%s1519_s3 + $0x78] sm:$0xff] }
  0x22   : > { %261 = vadd.xlane.f32.xlu0 %v260_v24  ;;  %v275_v43 = vsel %vm256_vm1, %v254_v37, 0.0  ;;  %v278_v44 = vsel %vm256_vm1, %v255_v39, 0.0  ;;  %v299_v49 = vmul.f32 %v226_v45, %v226_v45  ;;  %v300_v50 = vmul.f32 %v227_v46, %v227_v46 }
  0x23   : > { %267 = vadd.xlane.f32.xlu1 %v266_v28  ;;  %v1199_v47 = vpack.c.bf16 %v298_v42, %v297_v41  ;;  %v1246_v55 = vpack.c.bf16 %v229_v53, %v228_v52  ;;  %v301_v56 = vmul.f32 %v228_v52, %v228_v52  ;;  %v302_v57 = vmul.f32 %v229_v53, %v229_v53 }
  0x24   : > { %v1203_v54 = vpack.c.bf16 %v300_v50, %v299_v49  ;;  %v1252_v61 = vpack.c.bf16 %v231_v59, %v230_v58  ;;  %v303_v62 = vmul.f32 %v230_v58, %v230_v58  ;;  %v304_v63 = vmul.f32 %v231_v59, %v231_v59 }
  0x25   : > { %v1207_v60 = vpack.c.bf16 %v302_v57, %v301_v56  ;;  %v1258_v5 = vpack.c.bf16 %v233_v3, %v232_v1  ;;  %v305_v6 = vmul.f32 %v232_v1, %v232_v1  ;;  %v306_v7 = vmul.f32 %v233_v3, %v233_v3 }
  0x26   : > { %270 = vadd.xlane.f32.xlu0 %v269_v35  ;;  %v1211_v4 = vpack.c.bf16 %v304_v63, %v303_v62  ;;  %v1264_v13 = vpack.c.bf16 %v235_v9, %v234_v8  ;;  %v307_v14 = vmul.f32 %v234_v8, %v234_v8  ;;  %v308_v15 = vmul.f32 %v235_v9, %v235_v9 }
  0x27   : > { %1233 = vmatpush3.bf16.xpose.msk.msra.mxu1 %vm1523_vm3, %v1228_v21  ;;  %273 = vadd.xlane.f32.xlu1 %v272_v38  ;;  %v1215_v12 = vpack.c.bf16 %v306_v7, %v305_v6  ;;  %v444_v19 = vmul.f32 2.0, %v1531_v10  ;;  %v446_v21 = vmul.f32 2.0, %v1543_v16  ;;  %v447_v22 = vmul.f32 2.0, %v1546_v17 }
  0x28   : > { %1197 = vmatpush3.bf16.xpose.msk.msra.mxu0 %vm1523_vm3, %v1195_v34  ;;  %1236 = vmatprep.subr.msk.bf16.mxu1 %vm1523_vm3, %v1234_v36  ;;  %v1219_v18 = vpack.c.bf16 %v308_v15, %v307_v14  ;;  %v1434_v24 = vmov 1.0   ;;  %v449_v2 = vmul.f32 2.0, %v1569_v29  ;;  %v450_v10 = vmul.f32 2.0, %v1576_v33 }
  0x29   : > { %1198 = vmatprep.subr.bf16.mxu0 %v1430_v0 }
  0x2a   : > { %276 = vadd.xlane.f32.xlu0 %v275_v43 }
  0x2b   : > { %279 = vadd.xlane.f32.xlu1 %v278_v44 }
  0x2f   : > { %1239 = vmatpush3.bf16.xpose.msk.msra.mxu1 %vm1523_vm3, %v1234_v36 }
  0x30   : > { %1201 = vmatpush3.bf16.xpose.msk.msra.mxu0 %vm1523_vm3, %v1199_v47  ;;  %1242 = vmatprep.subr.msk.bf16.mxu1 %vm1523_vm3, %v1240_v48 }
  0x31   : > { %1202 = vmatprep.subr.bf16.mxu0 %v1430_v0 }
  0x37   : > { %1245 = vmatpush3.bf16.xpose.msk.msra.mxu1 %vm1523_vm3, %v1240_v48 }
  0x38   : > { %1205 = vmatpush3.bf16.xpose.msk.msra.mxu0 %vm1523_vm3, %v1203_v54  ;;  %1248 = vmatprep.subr.msk.bf16.mxu1 %vm1523_vm3, %v1246_v55 }
  0x39   : > { %1206 = vmatprep.subr.bf16.mxu0 %v1430_v0 }
  0x3f   : > { %1251 = vmatpush3.bf16.xpose.msk.msra.mxu1 %vm1523_vm3, %v1246_v55 }
  0x40   : > { %1209 = vmatpush3.bf16.xpose.msk.msra.mxu0 %vm1523_vm3, %v1207_v60  ;;  %1254 = vmatprep.subr.msk.bf16.mxu1 %vm1523_vm3, %v1252_v61 }
  0x41   : > { %1210 = vmatprep.subr.bf16.mxu0 %v1430_v0 }
  0x47   : > { %1257 = vmatpush3.bf16.xpose.msk.msra.mxu1 %vm1523_vm3, %v1252_v61 }
  0x48   : > { %1213 = vmatpush3.bf16.xpose.msk.msra.mxu0 %vm1523_vm3, %v1211_v4  ;;  %1260 = vmatprep.subr.msk.bf16.mxu1 %vm1523_vm3, %v1258_v5 }
  0x49   : > { %1214 = vmatprep.subr.bf16.mxu0 %v1430_v0 }
  0x4f   : > { %1263 = vmatpush3.bf16.xpose.msk.msra.mxu1 %vm1523_vm3, %v1258_v5 }
  0x50   : > { %1217 = vmatpush3.bf16.xpose.msk.msra.mxu0 %vm1523_vm3, %v1215_v12  ;;  %1266 = vmatprep.subr.msk.bf16.mxu1 %vm1523_vm3, %v1264_v13 }
  0x51   : > { %1218 = vmatprep.subr.bf16.mxu0 %v1430_v0  ;;  %v448_v0 = vmul.f32 2.0, %v1557_v23 }
  0x57   : > { %1269 = vmatpush3.bf16.xpose.msk.msra.mxu1 %vm1523_vm3, %v1264_v13 }
  0x58   : > { %1221 = vmatpush3.bf16.xpose.msk.msra.mxu0 %vm1523_vm3, %v1219_v18 }
  0x5e   : > { %1179 = vmatmul.mubr.msk.f32.vlgmr.msra.gmra.mrb[0].mxu1 %vm256_vm1, %v444_v19 }
  0x5f   : > { %1144 = vmatmul.mubr.msk.f32.vlgmr.msra.gmra.mrb[0].mxu0 %vm256_vm1, %v1434_v24  ;;  %1181 = vmatprep.mubr.msk.f32.mxu1 %vm256_vm1, %v445_v20 }
  0x62   : > { %1182 = vmatmul.mubr.msk.f32.gmra.mrb[2].mxu1 %vm256_vm1, %v446_v21 }
  0x63   : > { %1184 = vmatprep.mubr.msk.f32.mxu1 %vm256_vm1, %v447_v22 }
  0x66   : > { %1185 = vmatmul.mubr.msk.f32.gmra.mrb[4].mxu1 %vm256_vm1, %v448_v0 }
  0x67   : > { %1187 = vmatprep.mubr.msk.f32.mxu1 %vm256_vm1, %v449_v2 }
  0x6a   : > { %1188 = vmatmul.mubr.msk.f32.gmra.mrb[6].mxu1 %vm256_vm1, %v450_v10 }
  0xab   : > { %v259_v11 = vpop.xlane.xlu0 %258 }
  0xac   : > { %282 = vst.msk [vmem:[#allocation2] sm:$0xff] %vm281_vm4, %v259_v11  ;;  %v265_v16 = vpop.xlane.xlu1 %264 }
  0xad   : > { %284 = vst.msk [vmem:[#allocation2 + $0x10] sm:$0xff] %vm281_vm4, %v265_v16 }
  0xaf   : > { %v262_v17 = vpop.xlane.xlu0 %261 }
  0xb0   : > { %283 = vst.msk [vmem:[#allocation2 + $0x8] sm:$0xff] %vm281_vm4, %v262_v17  ;;  %v268_v23 = vpop.xlane.xlu1 %267  ;;  %v776_v17 = vlaneseq }
  0xb1   : > { %285 = vst.msk [vmem:[#allocation2 + $0x18] sm:$0xff] %vm281_vm4, %v268_v23 }
  0xb2   : > { %v777_v23 = vand.u32 127, %v776_v17 }
  0xb3   : > { %v433_v25 = vld [vmem:[#allocation2] sm:$0xff]  ;;  %v271_v26 = vpop.xlane.xlu0 %270 }
  0xb4   : > { %631 = vperm.xlu0 %1330, %v433_v25   ;;  %286 = vst.msk [vmem:[#allocation2 + $0x20] sm:$0xff] %vm281_vm4, %v271_v26  ;;  %v274_v27 = vpop.xlane.xlu1 %273  ;;  %v435_v30 = vld [vmem:[#allocation2 + $0x10] sm:$0xff]  ;;  %vm781_vm6 = vcmp.lt.s32.totalorder %v777_v23, 48 }
  0xb5   : > { %287 = vst.msk [vmem:[#allocation2 + $0x28] sm:$0xff] %vm281_vm4, %v274_v27 }
  0xb7   : > { %v434_v28 = vld [vmem:[#allocation2 + $0x8] sm:$0xff]  ;;  %v277_v29 = vpop.xlane.xlu0 %276 }
  0xb8   : > { %636 = vperm.xlu1 %1331, %v434_v28   ;;  %288 = vst.msk [vmem:[#allocation2 + $0x30] sm:$0xff] %vm281_vm4, %v277_v29  ;;  %v280_v31 = vpop.xlane.xlu1 %279  ;;  %v436_v32 = vld [vmem:[#allocation2 + $0x18] sm:$0xff] }
  0xb9   : > { %289 = vst.msk [vmem:[#allocation2 + $0x38] sm:$0xff] %vm281_vm4, %v280_v31 }
  0xbb   : > { %v437_v33 = vld [vmem:[#allocation2 + $0x20] sm:$0xff] }
  0xbc   : > { %641 = vperm.xlu1 %1331, %v435_v30   ;;  %v438_v34 = vld [vmem:[#allocation2 + $0x28] sm:$0xff] }
  0xbf   : > { %v439_v35 = vld [vmem:[#allocation2 + $0x30] sm:$0xff] }
  0xc0   : > { %646 = vperm.xlu1 %1331, %v436_v32   ;;  %v440_v36 = vld [vmem:[#allocation2 + $0x38] sm:$0xff] }
  0xc4   : > { %651 = vperm.xlu1 %1331, %v437_v33  }
  0xc8   : > { %656 = vperm.xlu1 %1331, %v438_v34  }
  0xcc   : > { %661 = vperm.xlu1 %1331, %v439_v35  }
  0xd0   : > { %666 = vperm.xlu1 %1331, %v440_v36  }
 0x131   : > { %v1180_v37 = vpop.f32.mrb[0].mxu1 }
 0x132   : > { %v427_v38 = vpop.f32.mrb[0].mxu0  ;;  %v590_v39 = vpop.f32.mrb[1].mxu1 }
 0x133   : > { %432 = vst [vmem:[#allocation3] sm:$0x1] %v427_v38  ;;  %v1145_v40 = vpop.f32.mrb[1].mxu0  ;;  %v632_v42 = vpop.permute.xlu0 %631 }
 0x134   : > { %v669_v45 = vsub.f32 %v632_v42, %v590_v39 }
 0x135   : > { %v1183_v41 = vpop.f32.mrb[2].mxu1 }
 0x136   : > { %v600_v43 = vpop.f32.mrb[3].mxu1 }
 0x137   : > { %v637_v44 = vpop.permute.xlu1 %636 }
 0x138   : > { %v670_v46 = vsub.f32 %v637_v44, %v1180_v37 }
 0x139   : > { %v1186_v47 = vpop.f32.mrb[4].mxu1 }
 0x13a   : > { %v1064_v48 = vld [vmem:[#allocation3] ss:$0 sm:$0xff]  ;;  %v610_v49 = vpop.f32.mrb[5].mxu1 }
 0x13b   : > { %v684_v50 = vadd.f32 %v1064_v48, %v670_v46  ;;  %v683_v51 = vadd.f32 %v1064_v48, %v669_v45  ;;  %v642_v52 = vpop.permute.xlu1 %641 }
 0x13c   : > { %v671_v53 = vsub.f32 %v642_v52, %v600_v43 }
 0x13d   : > { %693 = vmin.xlane.f32.xlu0 %v684_v50  ;;  %691 = vmin.xlane.f32.xlu1 %v683_v51  ;;  %v1189_v54 = vpop.f32.mrb[6].mxu1 }
 0x13e   : > { %v620_v55 = vpop.f32.mrb[7].mxu1  ;;  %v685_v56 = vadd.f32 %v1064_v48, %v671_v53 }
 0x13f   : > { %v647_v57 = vpop.permute.xlu1 %646 }
 0x140   : > { %v672_v58 = vsub.f32 %v647_v57, %v1183_v41 }
 0x141   : > { %695 = vmin.xlane.f32.xlu0 %v685_v56 }
 0x142   : > { %v686_v59 = vadd.f32 %v1064_v48, %v672_v58 }
 0x143   : > { %v652_v60 = vpop.permute.xlu1 %651 }
 0x144   : > { %v673_v61 = vsub.f32 %v652_v60, %v610_v49  ;;  %697 = vmin.xlane.f32.xlu1 %v686_v59 }
 0x146   : > { %v687_v62 = vadd.f32 %v1064_v48, %v673_v61 }
 0x147   : > { %v657_v63 = vpop.permute.xlu1 %656 }
 0x148   : > { %v674_v1 = vsub.f32 %v657_v63, %v1186_v47  ;;  %699 = vmin.xlane.f32.xlu0 %v687_v62  ;;  %v743_v3 = vmin.f32 %v683_v51, %v687_v62 }
 0x14a   : > { %v688_v4 = vadd.f32 %v1064_v48, %v674_v1 }
 0x14b   : > { %v662_v5 = vpop.permute.xlu1 %661 }
 0x14c   : > { %v675_v6 = vsub.f32 %v662_v5, %v620_v55  ;;  %v744_v7 = vmin.f32 %v684_v50, %v688_v4  ;;  %701 = vmin.xlane.f32.xlu1 %v688_v4 }
 0x14e   : > { %v747_v8 = vmin.f32 %v743_v3, %v744_v7  ;;  %v689_v9 = vadd.f32 %v1064_v48, %v675_v6 }
 0x14f   : > { %v667_v12 = vpop.permute.xlu1 %666 }
 0x150   : > { %v676_v13 = vsub.f32 %v667_v12, %v1189_v54  ;;  %703 = vmin.xlane.f32.xlu0 %v689_v9  ;;  %v745_v14 = vmin.f32 %v685_v56, %v689_v9 }
 0x152   : > { %v690_v15 = vadd.f32 %v1064_v48, %v676_v13 }
 0x154   : > { %v746_v18 = vmin.f32 %v686_v59, %v690_v15  ;;  %705 = vmin.xlane.f32.xlu1 %v690_v15 }
 0x156   : > { %v748_v19 = vmin.f32 %v745_v14, %v746_v18 }
 0x158   : > { %v749_v20 = vmin.f32 %v747_v8, %v748_v19 }
 0x15a   : > { %v750_v21 = vrot.slane %v749_v20, 4 }
 0x15c   : > { %v751_v22 = vmin.f32 %v749_v20, %v750_v21 }
 0x15e   : > { %v752_v24 = vrot.slane %v751_v22, 2 }
 0x160   : > { %v753_v0 = vmin.f32 %v751_v22, %v752_v24 }
 0x162   : > { %v754_v2 = vrot.slane %v753_v0, 1 }
 0x164   : > { %v755_v10 = vmin.f32 %v753_v0, %v754_v2 }
 0x166   : > { %763 = vst [vmem:[#allocation5] sm:$0x1] %v755_v10 }
 0x16d   : > { %v767_v11 = vld [vmem:[#allocation5] sm:$0x1] }
 0x16e   : > { %v768_v16 = vmax.f32 %v767_v11, 0.0 }
 0x170   : > { %1332 = vrsqrt.f32 %v768_v16  ;;  %vm771_vm5 = vcmp.eq.f32.partialorder %v768_v16, inf  ;;  %v774_v27 = vand.u32 2147483648, %v768_v16  ;;  %vm773_vm7 = vcmp.eq.f32.partialorder %v768_v16, 0.0 }
 0x17a   : > { %v1333_v25 = vpop.eup %1332 }
 0x17b   : > { %v770_v26 = vmul.f32 %v1333_v25, %v768_v16 }
 0x17d   : > { %v772_v28 = vsel %vm771_vm5, %v768_v16, %v770_v26 }
 0x17e   : > { %v775_v29 = vsel %vm773_vm7, %v774_v27, %v772_v28 }
 0x17f   : > { %v782_v30 = vsel %vm781_vm6, %v775_v29, 0.0 }
 0x180   : > { %v785_v31 = vsel %vm784_vm8, %v782_v30, 0.0 }
 0x181   : > { %786 = vadd.xlane.f32.xlu0 %v785_v31 }
 0x1ca   : > { %v692_v32 = vpop.xlane.xlu1 %691  ;;  %v694_v33 = vpop.xlane.xlu0 %693 }
 0x1cb   : > { %735 = vst.msk [vmem:[#allocation4] sm:$0xff] %vm281_vm4, %v692_v32  ;;  %736 = vst.msk [vmem:[#allocation4 + $0x8] sm:$0xff] %vm281_vm4, %v694_v33 }
 0x1ce   : > { %v696_v34 = vpop.xlane.xlu0 %695 }
 0x1cf   : > { %737 = vst.msk [vmem:[#allocation4 + $0x10] sm:$0xff] %vm281_vm4, %v696_v34 }
 0x1d1   : > { %v698_v37 = vpop.xlane.xlu1 %697 }
 0x1d2   : > { %v795_v35 = vld [vmem:[#allocation4] sm:$0xff]  ;;  %v796_v36 = vld [vmem:[#allocation4 + $0x8] sm:$0xff]  ;;  %738 = vst.msk [vmem:[#allocation4 + $0x18] sm:$0xff] %vm281_vm4, %v698_v37 }
 0x1d3   : > { %v803_v38 = vmax.f32 %v795_v35, 0.0  ;;  %v804_v39 = vmax.f32 %v796_v36, 0.0 }
 0x1d5   : > { %1334 = vrsqrt.f32 %v803_v38  ;;  %v700_v41 = vpop.xlane.xlu0 %699  ;;  %vm813_vm9 = vcmp.eq.f32.partialorder %v803_v38, inf  ;;  %vm820_vm10 = vcmp.eq.f32.partialorder %v804_v39, inf  ;;  %v816_v1 = vand.u32 2147483648, %v803_v38 }
 0x1d6   : > { %v797_v40 = vld [vmem:[#allocation4 + $0x10] sm:$0xff]  ;;  %1336 = vrsqrt.f32 %v804_v39  ;;  %739 = vst.msk [vmem:[#allocation4 + $0x20] sm:$0xff] %vm281_vm4, %v700_v41  ;;  %v823_v3 = vand.u32 2147483648, %v804_v39  ;;  %vm815_vm12 = vcmp.eq.f32.partialorder %v803_v38, 0.0  ;;  %vm822_vm13 = vcmp.eq.f32.partialorder %v804_v39, 0.0 }
 0x1d7   : > { %v805_v42 = vmax.f32 %v797_v40, 0.0 }
 0x1d9   : > { %1338 = vrsqrt.f32 %v805_v42  ;;  %v798_v43 = vld [vmem:[#allocation4 + $0x18] sm:$0xff]  ;;  %v702_v44 = vpop.xlane.xlu1 %701  ;;  %vm827_vm11 = vcmp.eq.f32.partialorder %v805_v42, inf  ;;  %v830_v5 = vand.u32 2147483648, %v805_v42  ;;  %vm829_vm15 = vcmp.eq.f32.partialorder %v805_v42, 0.0 }
 0x1da   : > { %v806_v45 = vmax.f32 %v798_v43, 0.0  ;;  %740 = vst.msk [vmem:[#allocation4 + $0x28] sm:$0xff] %vm281_vm4, %v702_v44 }
 0x1dc   : > { %1340 = vrsqrt.f32 %v806_v45  ;;  %vm834_vm14 = vcmp.eq.f32.partialorder %v806_v45, inf  ;;  %v837_v18 = vand.u32 2147483648, %v806_v45  ;;  %vm836_vm2 = vcmp.eq.f32.partialorder %v806_v45, 0.0 }
 0x1dd   : > { %v799_v46 = vld [vmem:[#allocation4 + $0x20] sm:$0xff]  ;;  %v704_v47 = vpop.xlane.xlu0 %703 }
 0x1de   : > { %v807_v48 = vmax.f32 %v799_v46, 0.0  ;;  %741 = vst.msk [vmem:[#allocation4 + $0x30] sm:$0xff] %vm281_vm4, %v704_v47 }
 0x1df   : > { %v1335_v49 = vpop.eup %1334 }
 0x1e0   : > { %v1337_v50 = vpop.eup %1336  ;;  %1342 = vrsqrt.f32 %v807_v48  ;;  %v812_v55 = vmul.f32 %v1335_v49, %v803_v38  ;;  %vm841_vm1 = vcmp.eq.f32.partialorder %v807_v48, inf  ;;  %v844_v0 = vand.u32 2147483648, %v807_v48 }
 0x1e1   : > { %v800_v51 = vld [vmem:[#allocation4 + $0x28] sm:$0xff]  ;;  %v706_v52 = vpop.xlane.xlu1 %705  ;;  %v819_v56 = vmul.f32 %v1337_v50, %v804_v39  ;;  %vm843_vm3 = vcmp.eq.f32.partialorder %v807_v48, 0.0 }
 0x1e2   : > { %v808_v54 = vmax.f32 %v800_v51, 0.0  ;;  %742 = vst.msk [vmem:[#allocation4 + $0x38] sm:$0xff] %vm281_vm4, %v706_v52  ;;  %v814_v61 = vsel %vm813_vm9, %v803_v38, %v812_v55 }
 0x1e3   : > { %v1339_v53 = vpop.eup %1338  ;;  %v821_v62 = vsel %vm820_vm10, %v804_v39, %v819_v56  ;;  %v817_v8 = vsel %vm815_vm12, %v816_v1, %v814_v61  ;;  %v904_v1 = vshrl.u32 %v776_v17, 7 }
 0x1e4   : > { %1344 = vrsqrt.f32 %v808_v54  ;;  %v826_v57 = vmul.f32 %v1339_v53, %v805_v42  ;;  %v824_v9 = vsel %vm822_vm13, %v823_v3, %v821_v62  ;;  %v868_v19 = vsel %vm281_vm4, %v817_v8, 0.0 }
 0x1e5   : > { %v801_v58 = vld [vmem:[#allocation4 + $0x30] sm:$0xff]  ;;  %v869_v20 = vsel %vm281_vm4, %v824_v9, 0.0  ;;  %vm848_vm5 = vcmp.eq.f32.partialorder %v808_v54, inf  ;;  %v851_v23 = vand.u32 2147483648, %v808_v54  ;;  %vm850_vm6 = vcmp.eq.f32.partialorder %v808_v54, 0.0 }
 0x1e6   : > { %v1341_v59 = vpop.eup %1340  ;;  %v809_v60 = vmax.f32 %v801_v58, 0.0  ;;  %v828_v4 = vsel %vm827_vm11, %v805_v42, %v826_v57  ;;  %v870_v11 = vadd.f32 %v869_v20, %v868_v19  ;;  %v783_v57 = vld [vmem:[#allocation7] sm:$0x1]  ;;  %v905_v3 = vsub.s32 0, %v904_v1 }
 0x1e7   : > { %v833_v63 = vmul.f32 %v1341_v59, %v806_v45  ;;  %v831_v15 = vsel %vm829_vm15, %v830_v5, %v828_v4 }
 0x1e8   : > { %1346 = vrsqrt.f32 %v809_v60  ;;  %v871_v2 = vsel %vm281_vm4, %v831_v15, 0.0  ;;  %vm855_vm7 = vcmp.eq.f32.partialorder %v809_v60, inf  ;;  %v858_v33 = vand.u32 2147483648, %v809_v60 }
 0x1e9   : > { %v802_v6 = vld [vmem:[#allocation4 + $0x38] sm:$0xff]  ;;  %v835_v13 = vsel %vm834_vm14, %v806_v45, %v833_v63  ;;  %v872_v28 = vadd.f32 %v871_v2, %v870_v11  ;;  %vm857_vm8 = vcmp.eq.f32.partialorder %v809_v60, 0.0 }
 0x1ea   : > { %v1343_v7 = vpop.eup %1342  ;;  %v810_v12 = vmax.f32 %v802_v6, 0.0  ;;  %v838_v24 = vsel %vm836_vm2, %v837_v18, %v835_v13 }
 0x1eb   : > { %v840_v14 = vmul.f32 %v1343_v7, %v807_v48  ;;  %v873_v25 = vsel %vm281_vm4, %v838_v24, 0.0 }
 0x1ec   : > { %1348 = vrsqrt.f32 %v810_v12  ;;  %v874_v32 = vadd.f32 %v873_v25, %v872_v28  ;;  %vm862_vm9 = vcmp.eq.f32.partialorder %v810_v12, inf  ;;  %v865_v42 = vand.u32 2147483648, %v810_v12 }
 0x1ed   : > { %v842_v21 = vsel %vm841_vm1, %v807_v48, %v840_v14  ;;  %vm864_vm10 = vcmp.eq.f32.partialorder %v810_v12, 0.0 }
 0x1ee   : > { %v1345_v22 = vpop.eup %1344  ;;  %v845_v16 = vsel %vm843_vm3, %v844_v0, %v842_v21 }
 0x1ef   : > { %v847_v10 = vmul.f32 %v1345_v22, %v808_v54  ;;  %v875_v30 = vsel %vm281_vm4, %v845_v16, 0.0 }
 0x1f0   : > { %v876_v37 = vadd.f32 %v875_v30, %v874_v32 }
 0x1f1   : > { %v849_v26 = vsel %vm848_vm5, %v808_v54, %v847_v10  ;;  %v867_v54 = vld [vmem:[#allocation6] sm:$0x1] }
 0x1f2   : > { %v1347_v27 = vpop.eup %1346  ;;  %v852_v29 = vsel %vm850_vm6, %v851_v23, %v849_v26 }
 0x1f3   : > { %v854_v31 = vmul.f32 %v1347_v27, %v809_v60  ;;  %v877_v34 = vsel %vm281_vm4, %v852_v29, 0.0 }
 0x1f4   : > { %v878_v41 = vadd.f32 %v877_v34, %v876_v37 }
 0x1f5   : > { %v856_v35 = vsel %vm855_vm7, %v809_v60, %v854_v31 }
 0x1f6   : > { %v1349_v36 = vpop.eup %1348  ;;  %v859_v38 = vsel %vm857_vm8, %v858_v33, %v856_v35 }
 0x1f7   : > { %v879_v39 = vsel %vm281_vm4, %v859_v38, 0.0  ;;  %v861_v40 = vmul.f32 %v1349_v36, %v810_v12 }
 0x1f8   : > { %v880_v44 = vadd.f32 %v879_v39, %v878_v41 }
 0x1f9   : > { %v863_v43 = vsel %vm862_vm9, %v810_v12, %v861_v40 }
 0x1fa   : > { %v866_v45 = vsel %vm864_vm10, %v865_v42, %v863_v43 }
 0x1fb   : > { %v881_v46 = vsel %vm281_vm4, %v866_v45, 0.0 }
 0x1fc   : > { %v882_v47 = vadd.f32 %v881_v46, %v880_v44 }
 0x1fe   : > { %v883_v48 = vrot.slane %v882_v47, 4 }
 0x200   : > { %v884_v49 = vadd.f32 %v883_v48, %v882_v47 }
 0x202   : > { %v885_v50 = vrot.slane %v884_v49, 2 }
 0x204   : > { %v886_v51 = vadd.f32 %v885_v50, %v884_v49 }
 0x206   : > { %v887_v52 = vrot.slane %v886_v51, 1 }
 0x208   : > { %v888_v53 = vadd.f32 %v887_v52, %v886_v51 }
 0x20a   : > { %v889_v55 = vmul.f32 0.015625, %v888_v53 }
 0x20c   : > { %v890_v56 = vadd.f32 %v889_v55, %v867_v54 }
 0x20e   : > { %v787_v58 = vpop.xlane.xlu0 %786  ;;  %892 = vst.msk [vmem:[#allocation6] sm:$0x1] %vm242_vm0, %v890_v56 }
 0x20f   : > { %v788_v59 = vmul.f32 0.020833334, %v787_v58 }
 0x211   : > { %v789_v60 = vadd.f32 %v788_v59, %v783_v57 }
 0x213   : > { %791 = vst.msk [vmem:[#allocation7] sm:$0x1] %vm242_vm0, %v789_v60 }
 0x215   : > { %v895_v61 = vld [vmem:[#allocation6] sm:$0x1] }
 0x21a   : > { %v896_v62 = vld [vmem:[#allocation7] sm:$0x1] }
 0x21b   : > { %v897_v63 = vadd.f32 %v896_v62, %v895_v61 }
 0x21d   : > { %900 = vperm.xlu1 %1331, %v897_v63  }
 0x29c   : > { %v901_v4 = vpop.permute.xlu1 %900 }
 0x29d   : > { %v906_v5 = vrot.slane %v901_v4, %v905_v3 }
 0x29f   : > { %907 = vst [vmem:[%s191_s6] sm:$0x1] %v906_v5 }
 0x2a0   : > { %1363 = shalt.err (!%p1360_p5)
}
 0x2a1   : > { %s1364_s25 = scalar_lea.hbm %s1691_s16, 16  ;;  %s1368_s28 = scalar_lea.hbm %s1740_s2, 32 }
 0x2a2   : > { %p1365_p6 = scmp.ne.s32.totalorder %s1691_s16, %s1364_s25  ;;  %p1369_p10 = scmp.lt.u32.totalorder %s1691_s16, %s1740_s2 }
 0x2a3   : > { %p1370_p11 = scmp.lt.u32.totalorder %s1368_s28, %s1364_s25  ;;  %p1372_p13 = scmp.lt.u32.totalorder %s1364_s25, %s1691_s16 }
 0x2a4   : > { %p1366_p7 = pnand %p1365_p6, %p1491_p4 }
 0x2a5   : > { %p1371_p12 = por %p1370_p11, %p1369_p10 }
 0x2a6   : > { %p1367_p9 = pneg %p1366_p7 }
 0x2a7   : > { %p1373_p0 = por %p1372_p13, %p1371_p12 }
 0x2a9   : > { %p1374_p1 = pnand %p1373_p0, %p1367_p9 }
 0x2ab   : > { %1377 = shalt.err (!%p1374_p1)
}
 0x2ac   : > { %1270 = dma.vmem_to_hbm [thread:$0]  (%p1491_p4), %s1693_s7, 16, %s1691_s16, %s909_s18  }
 0x2ad PF: > { %p1276_p2 = scmp.ge.s32.totalorder %s1428_s14, 2  ;;  %s933_s3 = sand.u32 1, %s1408_s9  }
 0x2ae   : > { %s934_s4 = scalar_lea.sflag [#allocation9], %s933_s3 }
 0x2af   : > { %p1273_p3 = pnand %p1276_p2, %p1498_p8 }
 0x2b1   : > { %1403 = dma.done.wait (!%p1273_p3), %s934_s4, 16  }
 0x2b2   : > { %1405 = vsyncadd (!%p1273_p3), %s934_s4, 4294967280  ;;  %s15_s14 = sadd.s32 1, %s1428_s14   ;;  %s1745_s9 = smov %s1412_s10 }
 0x2b3   : > { %p12_p5 = scmp.ge.s32.totalorder %s15_s14, 4   ;;  %s1746_s10 = smov %s1416_s11 }
 0x2b4   : > { %s1747_s11 = smov %s1504_s22  ;;  %s1748_s12 = smov %s1424_s13 }
 0x2b5   : > { %s1749_s13 = smov %s1751_s17  ;;  %14 = sbr.rel (!%p12_p5) target bundleno = 4 (0x4), region = 93 }
 0x2bc   :  { %938 = vsyncpa [#allocation9], 1 }
 0x2bd   :  { %940 = vsyncpa [#allocation9 + $0x1], 1 }

</bundles_post_ra>
